<compile_context>
chip_gen: v7x
topology: tpu7x:2x2x1
jax: 0.10.0
libtpu: 0.0.40
codegen_flags: <defaults>
</compile_context>

<pallas_src>
import functools

import numpy as np
import jax
import jax.numpy as jnp
from jax.experimental import pallas as pl
from jax.experimental.pallas import tpu as pltpu

ACT = jax.nn.silu  # SCN uses nn.SiLU as `act`

_ROW_TILE_CAP = 1024  # rows per grid step (85%+ of HBM roofline per measured curve)


# ----------------------------------------------------------------------------
# Small helpers
# ----------------------------------------------------------------------------
def _round_up(v, m):
    return ((v + m - 1) // m) * m


def _physical_vmem_bytes():
    try:
        info = pltpu.get_tpu_info()
        for attr in ("vmem_capacity_bytes", "vmem_bytes", "vmem_size_bytes"):
            v = getattr(info, attr, None)
            if v:
                return int(v)
    except Exception:
        pass
    return 64 * 1024 * 1024  # conservative (v7x per-TC)


_PHYS_VMEM = _physical_vmem_bytes()
_VMEM_LIMIT = max(32 * 1024 * 1024, min(int(_PHYS_VMEM * 0.85), 112 * 1024 * 1024))
_VMEM_BUDGET = max(24 * 1024 * 1024, min(int(_PHYS_VMEM * 0.60), 96 * 1024 * 1024))


def _row_tiling(m, per_row_bytes, const_bytes=0):
    """Largest row tile (mult of 16, <= cap) fitting the VMEM budget; keep >= 2 grid
    steps when possible so both v7x TensorCores get work on the 'parallel' axis."""
    m = max(int(m), 1)
    avail = max(_VMEM_BUDGET - int(const_bytes), 2 << 20)
    fit = max(16, (avail // max(int(per_row_bytes), 1)) // 16 * 16)
    cap = min(_ROW_TILE_CAP, fit)
    if m > 16:
        cap = min(cap, max(16, _round_up((m + 1) // 2, 16)))
    tm = max(16, min(cap, _round_up(m, 16)))
    m_pad = _round_up(m, tm)
    return int(tm), int(m_pad)


def _const_spec(shape):
    """BlockSpec for grid-invariant (weight/bias) operands: resident, single-buffered."""
    idx = lambda *_: (0,) * len(shape)
    try:
        return pl.BlockSpec(shape, idx, pipeline_mode=pl.Buffered(1))
    except Exception:  # older jax without pipeline_mode kwarg
        return pl.BlockSpec(shape, idx)


def _compiler_params(dim_sem):
    return pltpu.CompilerParams(dimension_semantics=tuple(dim_sem),
                                vmem_limit_bytes=_VMEM_LIMIT)


def _w(w):
    return jnp.asarray(w, jnp.bfloat16)


def _b(b):
    return jnp.asarray(b, jnp.float32).reshape(1, -1)


# ----------------------------------------------------------------------------
# Generic fused MLP chain kernel.
#   Layer 0 may take several inputs whose contributions are summed (replaces the
#   HBM concat): h = [act?](sum_i x_i @ W0_i [+ b0]); then y = [act?](h @ W1 ...)
# Row-tiled over rows; weights/biases resident in VMEM.
# ----------------------------------------------------------------------------
def _mlp_chain_kernel(*refs, n_in, acts, has_bias):
    in_refs = refs[:n_in]
    o_ref = refs[-1]
    params = refs[n_in:-1]
    pi = 0
    acc = None
    for r in in_refs:
        t = jnp.dot(r[...], params[pi][...], preferred_element_type=jnp.float32)
        pi += 1
        acc = t if acc is None else acc + t
    if has_bias[0]:
        acc = acc + params[pi][...]
        pi += 1
    h = ACT(acc) if acts[0] else acc
    for li in range(1, len(acts)):
        y = jnp.dot(h.astype(jnp.bfloat16), params[pi][...],
                    preferred_element_type=jnp.float32)
        pi += 1
        if has_bias[li]:
            y = y + params[pi][...]
            pi += 1
        h = ACT(y) if acts[li] else y
    o_ref[...] = h.astype(o_ref.dtype)


def pallas_mlp(xs, layers, out_dtype=jnp.float32):
    """Fused Linear(+SiLU) chain.

    xs:      list of row-aligned inputs (the first layer sums one matmul per input).
    layers:  layers[0] = (w_or_tuple_of_ws, bias_or_None, apply_act);
             layers[1:] = (w, bias_or_None, apply_act).
    """
    xs = list(xs)
    m = int(xs[0].shape[0])
    ws0, b0, act0 = layers[0]
    if not isinstance(ws0, (tuple, list)):
        ws0 = (ws0,)
    ws0 = [_w(w) for w in ws0]
    assert len(ws0) == len(xs)
    dout = [int(ws0[0].shape[1])] + [int(l[0].shape[1]) for l in layers[1:]]

    # VMEM budget -> row tile.
    in_cols = sum(int(x.shape[1]) for x in xs)
    out_bytes = int(np.dtype(out_dtype).itemsize)
    per_row = 2 * (in_cols * 2 + dout[-1] * out_bytes) + 2 * max(dout) * 4
    const_bytes = 2 * (sum(int(w.size) * 2 for w in ws0)
                       + (int(np.size(b0)) * 4 if b0 is not None else 0)
                       + sum(int(np.size(l[0])) * 2
                             + (int(np.size(l[1])) * 4 if l[1] is not None else 0)
                             for l in layers[1:]))
    tm, m_pad = _row_tiling(m, per_row, const_bytes)

    args, in_specs = [], []
    for x in xs:
        k = int(x.shape[1])
        args.append(jnp.pad(jnp.asarray(x, jnp.bfloat16), ((0, m_pad - m), (0, 0))))
        in_specs.append(pl.BlockSpec((tm, k), lambda i: (i, 0)))
    acts, has_bias = [], []
    for w in ws0:                                   # layer 0
        args.append(w)
        in_specs.append(_const_spec(w.shape))
    if b0 is not None:
        bb = _b(b0)
        args.append(bb)
        in_specs.append(_const_spec(bb.shape))
    acts.append(bool(act0))
    has_bias.append(b0 is not None)
    for (w, b, a) in layers[1:]:                    # later layers
        w = _w(w)
        args.append(w)
        in_specs.append(_const_spec(w.shape))
        if b is not None:
            bb = _b(b)
            args.append(bb)
            in_specs.append(_const_spec(bb.shape))
        acts.append(bool(a))
        has_bias.append(b is not None)

    flops = 2 * m_pad * sum(int(x.shape[1]) * dout[0] for x in xs)
    for li in range(1, len(dout)):
        flops += 2 * m_pad * dout[li - 1] * dout[li]
    transc = m_pad * sum(d for d, a in zip(dout, acts) if a)
    bytes_acc = sum(int(a_.size) * a_.dtype.itemsize for a_ in args) \
        + m_pad * dout[-1] * out_bytes

    kernel = functools.partial(_mlp_chain_kernel, n_in=len(xs),
                               acts=tuple(acts), has_bias=tuple(has_bias))
    out = pl.pallas_call(
        kernel,
        out_shape=jax.ShapeDtypeStruct((m_pad, dout[-1]), out_dtype),
        grid=(m_pad // tm,),
        in_specs=in_specs,
        out_specs=pl.BlockSpec((tm, dout[-1]), lambda i: (i, 0)),
        compiler_params=_compiler_params(("parallel",)),
        cost_estimate=pl.CostEstimate(flops=int(flops), transcendentals=int(transc),
                                      bytes_accessed=int(bytes_acc)),
    )(*args)
    return out[:m]


# ----------------------------------------------------------------------------
# Fused DistanceBlock kernel:
#   h = act(src_emb + tgt_emb + x_dist @ W1 + b1); out = act(h @ W2 + b2)
# ----------------------------------------------------------------------------
def _dist_block_kernel(xd_ref, se_ref, te_ref, w1_ref, b1_ref, w2_ref, b2_ref, o_ref):
    h = jnp.dot(xd_ref[...], w1_ref[...], preferred_element_type=jnp.float32)
    h = h + b1_ref[...] + se_ref[...].astype(jnp.float32) + te_ref[...].astype(jnp.float32)
    h = ACT(h)
    y = jnp.dot(h.astype(jnp.bfloat16), w2_ref[...],
                preferred_element_type=jnp.float32) + b2_ref[...]
    o_ref[...] = ACT(y).astype(o_ref.dtype)


def pallas_dist_block(x_dist, se, te, w1, b1, w2, b2):
    e, g = (int(d) for d in x_dist.shape)
    nb = int(w1.shape[1])
    per_row = 2 * ((g + 2 * nb) * 2 + nb * 2) + 2 * nb * 4
    const = 2 * (int(w1.size) + int(w2.size)) * 2 + 2 * (int(b1.size) + int(b2.size)) * 4
    tm, e_pad = _row_tiling(e, per_row, const)
    pad = e_pad - e

    args = [jnp.pad(x_dist, ((0, pad), (0, 0))),
            jnp.pad(se, ((0, pad), (0, 0))),
            jnp.pad(te, ((0, pad), (0, 0))),
            w1, b1, w2, b2]
    in_specs = [pl.BlockSpec((tm, g), lambda i: (i, 0)),
                pl.BlockSpec((tm, nb), lambda i: (i, 0)),
                pl.BlockSpec((tm, nb), lambda i: (i, 0)),
                _const_spec(w1.shape), _const_spec(b1.shape),
                _const_spec(w2.shape), _const_spec(b2.shape)]
    flops = 2 * e_pad * (g * nb + nb * nb)
    transc = 2 * e_pad * nb
    bytes_acc = sum(int(a.size) * a.dtype.itemsize for a in args) + e_pad * nb * 2

    out = pl.pallas_call(
        _dist_block_kernel,
        out_shape=jax.ShapeDtypeStruct((e_pad, nb), jnp.bfloat16),
        grid=(e_pad // tm,),
        in_specs=in_specs,
        out_specs=pl.BlockSpec((tm, nb), lambda i: (i, 0)),
        compiler_params=_compiler_params(("parallel",)),
        cost_estimate=pl.CostEstimate(flops=int(flops), transcendentals=int(transc),
                                      bytes_accessed=int(bytes_acc)),
    )(*args)
    return out[:e]


# ----------------------------------------------------------------------------
# Fused MessageBlock kernel.  grid = (row_tiles, num_y), Y innermost ("arbitrary").
#   xe = act(x_edge_raw @ Wd + bd)         -- computed once per row tile (y == 0)
#   p  = act(src @ Wp_a + tgt @ Wp_b + bp) * xe
#   p  = act(p @ We1 + b1);  out[y, rows] = act(p @ We2 + b2)
# No intermediate touches HBM; per-step VMEM is independent of num_y.
# ----------------------------------------------------------------------------
def _message_kernel(xe_ref, xs_ref, xt_ref, wd_ref, bd_ref, wpa_ref, wpb_ref,
                    bp_ref, w1_ref, b1_ref, w2_ref, b2_ref, o_ref, xe_scr):
    @pl.when(pl.program_id(1) == 0)
    def _():
        xe_scr[...] = ACT(jnp.dot(xe_ref[...], wd_ref[...],
                                  preferred_element_type=jnp.float32) + bd_ref[...])

    p = (jnp.dot(xs_ref[0], wpa_ref[...], preferred_element_type=jnp.float32)
         + jnp.dot(xt_ref[0], wpb_ref[...], preferred_element_type=jnp.float32)
         + bp_ref[...])
    p = ACT(p) * xe_scr[...]
    p = ACT(jnp.dot(p.astype(jnp.bfloat16), w1_ref[...],
                    preferred_element_type=jnp.float32) + b1_ref[...])
    p = ACT(jnp.dot(p.astype(jnp.bfloat16), w2_ref[...],
                    preferred_element_type=jnp.float32) + b2_ref[...])
    o_ref[0] = p.astype(o_ref.dtype)


def pallas_message_block(xe_raw, x_msg_src, x_msg_tgt,
                         wd, bd, wpa, wpb, bp, w1, b1, w2, b2, tm):
    """xe_raw: (E_pad, NB) bf16; x_msg_src/tgt: (Y, E_pad, Sr*C) bf16.
    Returns (Y, E_pad, Sr*C) bf16."""
    num_y, e_pad, k = (int(d) for d in x_msg_src.shape)
    nb = int(xe_raw.shape[1])
    wd, wpa, wpb, w1, w2 = map(_w, (wd, wpa, wpb, w1, w2))
    bd, bp, b1, b2 = map(_b, (bd, bp, b1, b2))
    h = int(wd.shape[1])
    sc = int(w2.shape[1])

    args = [xe_raw, x_msg_src, x_msg_tgt, wd, bd, wpa, wpb, bp, w1, b1, w2, b2]
    in_specs = [
        pl.BlockSpec((tm, nb), lambda i, y: (i, 0)),
        pl.BlockSpec((1, tm, k), lambda i, y: (y, i, 0)),
        pl.BlockSpec((1, tm, k), lambda i, y: (y, i, 0)),
        _const_spec(wd.shape), _const_spec(bd.shape),
        _const_spec(wpa.shape), _const_spec(wpb.shape), _const_spec(bp.shape),
        _const_spec(w1.shape), _const_spec(b1.shape),
        _const_spec(w2.shape), _const_spec(b2.shape),
    ]
    flops = 2 * e_pad * nb * h + num_y * e_pad * (4 * k * h + 2 * h * h + 2 * h * sc)
    transc = e_pad * h + num_y * e_pad * (2 * h + sc)
    bytes_acc = sum(int(a.size) * a.dtype.itemsize for a in args) + num_y * e_pad * sc * 2

    out = pl.pallas_call(
        _message_kernel,
        out_shape=jax.ShapeDtypeStruct((num_y, e_pad, sc), jnp.bfloat16),
        grid=(e_pad // tm, num_y),
        in_specs=in_specs,
        out_specs=pl.BlockSpec((1, tm, sc), lambda i, y: (y, i, 0)),
        scratch_shapes=[pltpu.VMEM((tm, h), jnp.float32)],
        compiler_params=_compiler_params(("parallel", "arbitrary")),
        cost_estimate=pl.CostEstimate(flops=int(flops), transcendentals=int(transc),
                                      bytes_accessed=int(bytes_acc)),
    )(*args)
    return out


# ----------------------------------------------------------------------------
# Parameter init helpers (deterministic, PyTorch-like uniform ranges)
# ----------------------------------------------------------------------------
def init_linear(key, in_f, out_f, bias=True):
    k1, k2 = jax.random.split(key)
    bound = 1.0 / (in_f ** 0.5)
    w = jax.random.uniform(k1, (in_f, out_f), jnp.float32, -bound, bound)
    b = jax.random.uniform(k2, (out_f,), jnp.float32, -bound, bound) if bias else None
    return w, b


def gaussian_smearing(d, start, stop, num_gaussians):
    offset = jnp.linspace(start, stop, num_gaussians)
    coeff = -0.5 / (offset[1] - offset[0]) ** 2
    diff = d[:, None] - offset[None, :]
    return jnp.exp(coeff * diff ** 2)


# ----------------------------------------------------------------------------
# Synthetic spherical-harmonics helper (deterministic matrices).
# TODO(synk): real SCN uses per-edge Wigner rotation matrices; here the rotation /
#             grid-projection matrices are fixed per resolution (shapes match).
# ----------------------------------------------------------------------------
class SynthSphHarm:
    def __init__(self, key, sphere_basis, sphere_basis_reduce, num_y_rotations,
                 num_bands, grid_res):
        self.sphere_basis = sphere_basis
        self.sphere_basis_reduce = sphere_basis_reduce
        self.num_y_rotations = num_y_rotations
        self.num_bands = num_bands
        self.grid_res = grid_res
        k1, k2, k3, k4, k5 = jax.random.split(key, 5)
        self.rot = 0.1 * jax.random.normal(
            k1, (num_y_rotations, sphere_basis_reduce, sphere_basis), jnp.float32)
        self.rot_inv = 0.1 * jax.random.normal(
            k2, (sphere_basis, sphere_basis_reduce), jnp.float32)
        self.y_comb = jax.random.normal(
            k3, (num_y_rotations,), jnp.float32) / num_y_rotations
        self.to_grid = 0.1 * jax.random.normal(
            k4, (grid_res, num_bands, sphere_basis), jnp.float32)
        self.from_grid = 0.1 * jax.random.normal(
            k5, (sphere_basis, grid_res), jnp.float32)

    def Rotate(self, x):                       # (E, sb, C) -> (Y, E, Sr*C) bf16
        y = jnp.einsum('ysi,eic->yesc', self.rot, x.astype(jnp.float32))
        Y, E, S, C = y.shape
        return y.reshape(Y, E, S * C).astype(jnp.bfloat16)

    def CombineYRotations(self, m):            # (Y, E, Sr*C) -> (E, Sr, C)
        Y, E, SC = m.shape
        m = m.reshape(Y, E, self.sphere_basis_reduce, SC // self.sphere_basis_reduce)
        return jnp.einsum('y,yesc->esc', self.y_comb, m.astype(jnp.float32))

    def RotateInv(self, x):                    # (E, Sr, C) -> (E, sb, C)
        return jnp.einsum('bs,esc->ebc', self.rot_inv, x)

    def ToGrid(self, x, channels):             # (N, sb, C) -> (N*G, num_bands*C)
        y = jnp.einsum('gbi,nic->ngbc', self.to_grid, x.astype(jnp.float32))
        return y.reshape(x.shape[0] * self.grid_res, self.num_bands * channels)

    def FromGrid(self, xg, channels):          # (N*G, C) -> (N, sb, C)
        xg = xg.reshape(-1, self.grid_res, channels)
        return jnp.einsum('ig,ngc->nic', self.from_grid, xg)


# ----------------------------------------------------------------------------
# Blocks
# ----------------------------------------------------------------------------
class DistanceBlock:
    def __init__(self, key, in_channels, num_basis_functions, distance_expansion,
                 max_num_elements):
        ks = jax.random.split(key, 4)
        self.distance_expansion = distance_expansion
        w1, b1 = init_linear(ks[0], in_channels, num_basis_functions)
        w2, b2 = init_linear(ks[3], num_basis_functions, num_basis_functions)
        # casting hoisted to init
        self.w1, self.b1 = _w(w1), _b(b1)
        self.w2, self.b2 = _w(w2), _b(b2)
        self.source_embedding = jax.random.uniform(
            ks[1], (max_num_elements, num_basis_functions), jnp.float32,
            -0.001, 0.001).astype(jnp.bfloat16)
        self.target_embedding = jax.random.uniform(
            ks[2], (max_num_elements, num_basis_functions), jnp.float32,
            -0.001, 0.001).astype(jnp.bfloat16)

    def __call__(self, edge_distance, source_element, target_element):
        x_dist = self.distance_expansion(edge_distance).astype(jnp.bfloat16)
        se = self.source_embedding[source_element]   # gathers: JAX glue
        te = self.target_embedding[target_element]
        return pallas_dist_block(x_dist, se, te, self.w1, self.b1, self.w2, self.b2)


class MessageBlock:
    def __init__(self, key, sphere_channels_reduce, hidden_channels,
                 num_basis_functions, sphharm):
        ks = jax.random.split(key, 4)
        self.sphharm = sphharm
        self.hidden_channels = int(hidden_channels)
        self.sphere_channels_reduce = sphere_channels_reduce
        k_half = sphharm.sphere_basis_reduce * sphere_channels_reduce
        self._k_half = k_half
        w_dist, b_dist = init_linear(ks[0], num_basis_functions, hidden_channels)
        w_proj, b_proj = init_linear(ks[1], 2 * k_half, hidden_channels)
        w_e1, b_e1 = init_linear(ks[2], hidden_channels, hidden_channels)
        w_e2, b_e2 = init_linear(ks[3], hidden_channels, k_half)
        # cast + split (replaces the HBM concat) hoisted to init
        self.w_dist, self.b_dist = _w(w_dist), _b(b_dist)
        self.w_proj_src = _w(w_proj[:k_half])
        self.w_proj_tgt = _w(w_proj[k_half:])
        self.b_proj = _b(b_proj)
        self.w_e1, self.b_e1 = _w(w_e1), _b(b_e1)
        self.w_e2, self.b_e2 = _w(w_e2), _b(b_e2)

    def _tiling(self, n_edges):
        k, h = self._k_half, self.hidden_channels
        nb = int(self.w_dist.shape[0])
        sc = int(self.w_e2.shape[1])
        per_row = 2 * ((nb + 2 * k) * 2 + sc * 2) + 4 * h * 4 + 2 * sc * 4
        const = 2 * 2 * int(self.w_dist.size + self.w_proj_src.size + self.w_proj_tgt.size
                            + self.w_e1.size + self.w_e2.size) \
            + 2 * 4 * int(self.b_dist.size + self.b_proj.size
                          + self.b_e1.size + self.b_e2.size)
        return _row_tiling(n_edges, per_row, const)

    def __call__(self, x, x_edge, edge_index):
        n_edges = int(edge_index.shape[1])
        tm, e_pad = self._tiling(n_edges)
        pad = e_pad - n_edges
        # Pad edge indices (dummy edges gather atom 0) -> rotated messages come out
        # already row-padded; no extra HBM pad pass over the big activation.
        ei = jnp.pad(edge_index, ((0, 0), (0, pad)))
        x_msg_source = self.sphharm.Rotate(x[ei[0]])    # (Y, E_pad, Sr*C) bf16
        x_msg_target = self.sphharm.Rotate(x[ei[1]])
        xe_raw = jnp.pad(jnp.asarray(x_edge, jnp.bfloat16), ((0, pad), (0, 0)))
        msg = pallas_message_block(
            xe_raw, x_msg_source, x_msg_target,
            self.w_dist, self.b_dist,
            self.w_proj_src, self.w_proj_tgt, self.b_proj,
            self.w_e1, self.b_e1, self.w_e2, self.b_e2, tm=tm)   # (Y, E_pad, Sr*C) bf16
        msg = msg[:, :n_edges]
        msg = self.sphharm.CombineYRotations(msg)                # (E, Sr, C) f32
        msg = self.sphharm.RotateInv(msg)                        # (E, sb, C)
        return msg


class EdgeBlock:
    def __init__(self, key, num_resolutions, sphere_channels_reduce,
                 hidden_channels_list, cutoff_list, sphharm_list, sphere_channels,
                 distance_expansion, max_num_elements, num_basis_functions,
                 num_gaussians, use_grid):
        self.num_resolutions = num_resolutions
        self.hidden_channels_list = hidden_channels_list
        self.sphere_channels = sphere_channels
        self.sphere_channels_reduce = sphere_channels_reduce
        self.cutoff_list = cutoff_list
        self.sphharm_list = sphharm_list
        self.max_num_elements = max_num_elements
        self.num_basis_functions = num_basis_functions
        self.use_grid = use_grid
        self.num_gaussians = num_gaussians

        keys = jax.random.split(key, 8)
        self.dist_block = DistanceBlock(
            keys[0], num_gaussians, num_basis_functions, distance_expansion,
            max_num_elements)
        self.message_blocks = []
        for i in range(num_resolutions):
            self.message_blocks.append(
                MessageBlock(keys[1 + i], sphere_channels_reduce,
                             int(hidden_channels_list[i]), num_basis_functions,
                             sphharm_list[i]))
        if sphere_channels != sphere_channels_reduce:
            w_down, _ = init_linear(keys[4], sphere_channels,
                                    sphere_channels_reduce, bias=False)
            w_up, _ = init_linear(keys[5], sphere_channels_reduce,
                                  sphere_channels, bias=False)
            self.w_down, self.w_up = _w(w_down), _w(w_up)
        if use_grid:
            nbC = sphharm_list[0].num_bands * sphere_channels_reduce
            nb2c = 2 * nbC
            k6a, k6b, k6c = jax.random.split(keys[6], 3)
            w_s1, b_s1 = init_linear(k6a, nb2c, nb2c)
            w_s2, b_s2 = init_linear(k6b, nb2c, 2 * sphere_channels_reduce)
            w_s3, b_s3 = init_linear(
                k6c, 2 * sphere_channels_reduce, sphere_channels_reduce)
            # split fc1_sphere rows along the concat boundary (replaces the HBM concat)
            self.w_s1_a, self.w_s1_b = _w(w_s1[:nbC]), _w(w_s1[nbC:])
            self.b_s1 = _b(b_s1)
            self.w_s2, self.b_s2 = _w(w_s2), _b(b_s2)
            self.w_s3, self.b_s3 = _w(w_s3), _b(b_s3)

    def __call__(self, x, atomic_numbers, edge_distance, edge_index, cutoff_index):
        C = self.sphere_channels_reduce
        sb0 = self.sphharm_list[0].sphere_basis

        x_edge = self.dist_block(edge_distance,
                                 atomic_numbers[edge_index[0]],
                                 atomic_numbers[edge_index[1]])        # (E, NB) bf16

        x_new = jnp.zeros((x.shape[0], sb0, C), dtype=x.dtype)

        if self.sphere_channels != C:
            x_down = pallas_mlp([x.reshape(-1, self.sphere_channels)],
                                [(self.w_down, None, False)],
                                out_dtype=jnp.bfloat16)
        else:
            x_down = x.reshape(-1, C)
        x_down = x_down.reshape(-1, sb0, C)

        for i, interaction in enumerate(self.message_blocks):
            start_idx = int(cutoff_index[i])
            end_idx = int(cutoff_index[i + 1])
            sb_i = self.sphharm_list[i].sphere_basis
            x_message = interaction(x_down[:, 0:sb_i, :],
                                    x_edge[start_idx:end_idx],
                                    edge_index[:, start_idx:end_idx])
            tgt = edge_index[1, start_idx:end_idx]
            # TODO(synk): scatter-add (torch index_add_) stays as XLA scatter; an
            #             aliased Pallas scatter-accumulate (sorted targets +
            #             input_output_aliases) would avoid the per-resolution copy.
            x_new = x_new.at[tgt, 0:sb_i, :].add(x_message.astype(x_new.dtype))

        if self.use_grid:
            sph0 = self.sphharm_list[0]
            xg_a = sph0.ToGrid(x_down, C)
            xg_b = sph0.ToGrid(x_new, C)
            # fc1_sphere(SiLU) -> fc2_sphere(SiLU) -> fc3_sphere fused in one kernel,
            # first layer takes the two grid tensors separately (no HBM concat).
            x_grid = pallas_mlp([xg_a, xg_b],
                                [((self.w_s1_a, self.w_s1_b), self.b_s1, True),
                                 (self.w_s2, self.b_s2, True),
                                 (self.w_s3, self.b_s3, False)],
                                out_dtype=jnp.float32)
            x_new = sph0.FromGrid(x_grid, C)

        if self.sphere_channels != C:
            x_new = pallas_mlp([x_new.reshape(-1, C)],
                               [(self.w_up, None, False)],
                               out_dtype=jnp.float32)

        x_new = x_new.reshape(-1, sb0, self.sphere_channels)
        return x_new


# ----------------------------------------------------------------------------
# Example run
# ----------------------------------------------------------------------------
if __name__ == "__main__":
    key = jax.random.PRNGKey(0)
    (k_model, k_sph0, k_sph1, k_x, k_an, k_d, k_ei) = jax.random.split(key, 7)

    # config (small, consistent with module)
    num_resolutions = 2
    sphere_channels = 8
    sphere_channels_reduce = 4
    num_gaussians = 8
    num_basis_functions = 16
    max_num_elements = 10
    hidden_channels_list = [16, 8]
    cutoff_list = [4.0, 8.0]
    use_grid = True

    sphharm_list = [
        SynthSphHarm(k_sph0, sphere_basis=9, sphere_basis_reduce=4,
                     num_y_rotations=2, num_bands=2, grid_res=6),
        SynthSphHarm(k_sph1, sphere_basis=4, sphere_basis_reduce=2,
                     num_y_rotations=2, num_bands=2, grid_res=6),
    ]

    def distance_expansion(d):
        return gaussian_smearing(d, 0.0, cutoff_list[-1], num_gaussians)

    edge_block = EdgeBlock(
        k_model, num_resolutions, sphere_channels_reduce, hidden_channels_list,
        cutoff_list, sphharm_list, sphere_channels, distance_expansion,
        max_num_elements, num_basis_functions, num_gaussians, use_grid)

    num_atoms = 8
    num_edges = 16
    cutoff_index = [0, 10, 16]   # edges per resolution (host ints)

    x = jax.random.normal(
        k_x, (num_atoms, sphharm_list[0].sphere_basis, sphere_channels), jnp.float32)
    atomic_numbers = jax.random.randint(k_an, (num_atoms,), 1, max_num_elements)
    edge_distance = jax.random.uniform(k_d, (num_edges,), jnp.float32, 0.5, 7.5)
    edge_index = jax.random.randint(k_ei, (2, num_edges), 0, num_atoms)

    out = edge_block(x, atomic_numbers, edge_distance, edge_index, cutoff_index)
    out = jax.block_until_ready(out)
    assert out.shape == (num_atoms, sphharm_list[0].sphere_basis, sphere_channels)
    assert bool(jnp.all(jnp.isfinite(out)))
    print("KERNEL_OK")
</pallas_src>

<mosaic_0001>
module attributes {stable_mosaic.version = 11 : i64} {
  func.func @_dist_block_kernel(%arg0: i32, %arg1: memref<16x8xbf16, #tpu.memory_space<vmem>>, %arg2: memref<16x16xbf16, #tpu.memory_space<vmem>>, %arg3: memref<16x16xbf16, #tpu.memory_space<vmem>>, %arg4: memref<8x16xbf16, #tpu.memory_space<vmem>>, %arg5: memref<1x16xf32, #tpu.memory_space<vmem>>, %arg6: memref<16x16xbf16, #tpu.memory_space<vmem>>, %arg7: memref<1x16xf32, #tpu.memory_space<vmem>>, %arg8: memref<16x16xbf16, #tpu.memory_space<vmem>>) attributes {dimension_semantics = [#tpu.dimension_semantics<parallel>], iteration_bounds = array<i64: 1>, scalar_prefetch = 0 : i64, scratch_operands = 0 : i64, tpu.core_type = #tpu.core_type<tc>, window_params = [{transform_indices = @transform_0, window_bounds = array<i64: 16, 8>}, {transform_indices = @transform_1, window_bounds = array<i64: 16, 16>}, {transform_indices = @transform_2, window_bounds = array<i64: 16, 16>}, {pipeline_mode = #tpu.pipeline_mode<synchronous>, transform_indices = @transform_3, window_bounds = array<i64: 8, 16>}, {pipeline_mode = #tpu.pipeline_mode<synchronous>, transform_indices = @transform_4, window_bounds = array<i64: 1, 16>}, {pipeline_mode = #tpu.pipeline_mode<synchronous>, transform_indices = @transform_5, window_bounds = array<i64: 16, 16>}, {pipeline_mode = #tpu.pipeline_mode<synchronous>, transform_indices = @transform_6, window_bounds = array<i64: 1, 16>}, {transform_indices = @transform_7, window_bounds = array<i64: 16, 16>}]} {
    %c0 = arith.constant 0 : index
    %c0_0 = arith.constant 0 : index
    %0 = vector.load %arg1[%c0, %c0_0] : memref<16x8xbf16, #tpu.memory_space<vmem>>, vector<16x8xbf16>
    %c0_1 = arith.constant 0 : index
    %c0_2 = arith.constant 0 : index
    %1 = vector.load %arg4[%c0_1, %c0_2] : memref<8x16xbf16, #tpu.memory_space<vmem>>, vector<8x16xbf16>
    %cst = arith.constant dense<0.000000e+00> : vector<16x16xf32>
    %2 = tpu.matmul %0, %1, %cst {dimension_numbers = #tpu.dot_dimension_numbers<[1], [0], [0], [1], [0, 0, 1, 1], [], []>} : vector<16x8xbf16>, vector<8x16xbf16>, vector<16x16xf32> -> vector<16x16xf32>
    %c0_3 = arith.constant 0 : index
    %c0_4 = arith.constant 0 : index
    %3 = vector.load %arg5[%c0_3, %c0_4] : memref<1x16xf32, #tpu.memory_space<vmem>>, vector<1x16xf32>
    %4 = vector.broadcast %3 : vector<1x16xf32> to vector<16x16xf32>
    %5 = arith.addf %2, %4 : vector<16x16xf32>
    %c0_5 = arith.constant 0 : index
    %c0_6 = arith.constant 0 : index
    %6 = vector.load %arg2[%c0_5, %c0_6] : memref<16x16xbf16, #tpu.memory_space<vmem>>, vector<16x16xbf16>
    %7 = arith.extf %6 : vector<16x16xbf16> to vector<16x16xf32>
    %8 = arith.addf %5, %7 : vector<16x16xf32>
    %c0_7 = arith.constant 0 : index
    %c0_8 = arith.constant 0 : index
    %9 = vector.load %arg3[%c0_7, %c0_8] : memref<16x16xbf16, #tpu.memory_space<vmem>>, vector<16x16xbf16>
    %10 = arith.extf %9 : vector<16x16xbf16> to vector<16x16xf32>
    %11 = arith.addf %8, %10 : vector<16x16xf32>
    %12 = arith.negf %11 : vector<16x16xf32>
    %13 = math.exp %12 : vector<16x16xf32>
    %cst_9 = arith.constant 1.000000e+00 : f32
    %14 = vector.broadcast %cst_9 : f32 to vector<16x16xf32>
    %15 = arith.addf %14, %13 : vector<16x16xf32>
    %16 = arith.divf %14, %15 : vector<16x16xf32>
    %17 = arith.mulf %11, %16 : vector<16x16xf32>
    %18 = arith.truncf %17 : vector<16x16xf32> to vector<16x16xbf16>
    %c0_10 = arith.constant 0 : index
    %c0_11 = arith.constant 0 : index
    %19 = vector.load %arg6[%c0_10, %c0_11] : memref<16x16xbf16, #tpu.memory_space<vmem>>, vector<16x16xbf16>
    %cst_12 = arith.constant dense<0.000000e+00> : vector<16x16xf32>
    %20 = tpu.matmul %18, %19, %cst_12 {dimension_numbers = #tpu.dot_dimension_numbers<[1], [0], [0], [1], [0, 0, 1, 1], [], []>} : vector<16x16xbf16>, vector<16x16xbf16>, vector<16x16xf32> -> vector<16x16xf32>
    %c0_13 = arith.constant 0 : index
    %c0_14 = arith.constant 0 : index
    %21 = vector.load %arg7[%c0_13, %c0_14] : memref<1x16xf32, #tpu.memory_space<vmem>>, vector<1x16xf32>
    %22 = vector.broadcast %21 : vector<1x16xf32> to vector<16x16xf32>
    %23 = arith.addf %20, %22 : vector<16x16xf32>
    %24 = arith.negf %23 : vector<16x16xf32>
    %25 = math.exp %24 : vector<16x16xf32>
    %cst_15 = arith.constant 1.000000e+00 : f32
    %26 = vector.broadcast %cst_15 : f32 to vector<16x16xf32>
    %27 = arith.addf %26, %25 : vector<16x16xf32>
    %28 = arith.divf %26, %27 : vector<16x16xf32>
    %29 = arith.mulf %23, %28 : vector<16x16xf32>
    %30 = arith.truncf %29 : vector<16x16xf32> to vector<16x16xbf16>
    %c0_16 = arith.constant 0 : index
    %c0_17 = arith.constant 0 : index
    %31 = vector.load %arg8[%c0_16, %c0_17] : memref<16x16xbf16, #tpu.memory_space<vmem>>, vector<16x16xbf16>
    tpu.vector_store %arg8[%c0_16, %c0_17], %30 {strides = array<i32>} : memref<16x16xbf16, #tpu.memory_space<vmem>>, vector<16x16xbf16>,
    return
  }
  func.func @transform_0(%arg0: i32) -> (i32, i32) {
    %c0_i32 = arith.constant 0 : i32
    %c0_i32_0 = arith.constant 0 : i32
    return %arg0, %c0_i32 : i32, i32
  }
  func.func @transform_1(%arg0: i32) -> (i32, i32) {
    %c0_i32 = arith.constant 0 : i32
    %c0_i32_0 = arith.constant 0 : i32
    return %arg0, %c0_i32 : i32, i32
  }
  func.func @transform_2(%arg0: i32) -> (i32, i32) {
    %c0_i32 = arith.constant 0 : i32
    %c0_i32_0 = arith.constant 0 : i32
    return %arg0, %c0_i32 : i32, i32
  }
  func.func @transform_3(%arg0: i32) -> (i32, i32) {
    %c0_i32 = arith.constant 0 : i32
    %c0_i32_0 = arith.constant 0 : i32
    %c0_i32_1 = arith.constant 0 : i32
    return %c0_i32, %c0_i32_0 : i32, i32
  }
  func.func @transform_4(%arg0: i32) -> (i32, i32) {
    %c0_i32 = arith.constant 0 : i32
    %c0_i32_0 = arith.constant 0 : i32
    %c0_i32_1 = arith.constant 0 : i32
    return %c0_i32, %c0_i32_0 : i32, i32
  }
  func.func @transform_5(%arg0: i32) -> (i32, i32) {
    %c0_i32 = arith.constant 0 : i32
    %c0_i32_0 = arith.constant 0 : i32
    %c0_i32_1 = arith.constant 0 : i32
    return %c0_i32, %c0_i32_0 : i32, i32
  }
  func.func @transform_6(%arg0: i32) -> (i32, i32) {
    %c0_i32 = arith.constant 0 : i32
    %c0_i32_0 = arith.constant 0 : i32
    %c0_i32_1 = arith.constant 0 : i32
    return %c0_i32, %c0_i32_0 : i32, i32
  }
  func.func @transform_7(%arg0: i32) -> (i32, i32) {
    %c0_i32 = arith.constant 0 : i32
    %c0_i32_0 = arith.constant 0 : i32
    return %arg0, %c0_i32 : i32, i32
  }
}

</mosaic_0001>

<bundles_post_ra>
// kernel: tpu_custom_call.1
= control target key start
LH: loop header
LB: loop body
LE: loop exit
PB: predicated region body
PF: predicated region fallthrough
CT: control target
= control target key end

     0   :  { %12 = vsyncpa [#allocation3], 0  ;;  %s431_s0 = inlined_call_operand.vmem [shape: bf16[16,8], index: 0, kind: input, shape index: {}]   ;;  %s432_s1 = inlined_call_operand.vmem [shape: bf16[16,16], index: 1, kind: input, shape index: {}]   ;;  %s433_s2 = inlined_call_operand.vmem [shape: bf16[16,16], index: 2, kind: input, shape index: {}]   ;;  %s434_s3 = inlined_call_operand.hbm [shape: bf16[8,16], index: 3, kind: input, shape index: {}]   ;;  %s435_s4 = inlined_call_operand.vmem [shape: f32[1,16], index: 4, kind: input, shape index: {}]   ;;  %s436_s5 = inlined_call_operand.vmem [shape: bf16[16,16], index: 5, kind: input, shape index: {}]   ;;  %s437_s6 = inlined_call_operand.vmem [shape: f32[1,16], index: 6, kind: input, shape index: {}]   ;;  %s438_s7 = inlined_call_operand.hbm [shape: bf16[16,16], index: 7, kind: output, shape index: {}]  }
   0x1   :  { %13 = vsyncpa [#allocation4], 0  ;;  %s343_s24 = smov [#allocation2]   ;;  %s295_s28 = scalar_lea.hbm %s434_s3, 64 }
   0x2   :  { %s26_s25 = sshll.u32 %s343_s24, 4  ;;  %p296_p0 = scmp.ne.s32.totalorder %s434_s3, %s295_s28  ;;  %s27_s25 = int_to_ptr.vmem [resolvable:$true] %s26_s25 }
   0x3   :  { %p299_p1 = scmp.lt.u32.totalorder %s295_s28, %s434_s3 }
   0x5   :  { %p301_p2 = pnand %p299_p1, %p296_p0 }
   0x7   :  { %304 = shalt.err (!%p301_p2)
}
   0x8   :  { %s305_s10 = scalar_lea.vmem %s27_s25, 64  ;;  %p310_p4 = scmp.lt.s32.totalorder %s27_s25, %s27_s25 }
   0x9   :  { %p306_p3 = scmp.ne.s32.totalorder %s27_s25, %s305_s10  ;;  %p311_p5 = scmp.lt.s32.totalorder %s305_s10, %s305_s10 }
   0xb   :  { %p312_p6 = por %p311_p5, %p310_p4 }
   0xd   :  { %p313_p7 = pnand %p312_p6, %p306_p3 }
   0xf   :  { %316 = shalt.err (!%p313_p7)
}
  0x10   :  { %29 = dma.hbm_to_vmem [thread:$0]  %s434_s3, 64, %s27_s25, [#allocation3]  }
  0x11   :  { %339 = dma.done.wait [#allocation3], 64  }
  0x12   :  { %340 = vsyncadd [#allocation3], 4294967232  ;;  %v344_v0 = vmov 0.0   ;;  %vm345_vm0 = vmmov 0   ;;  %vm59_vm1 = vcmask 1043456   ;;  %v277_v3 = vld [vmem:[%s431_s0] sm:$0xff]  }
  0x13   :  { %259 = vmatprep.subr.bf16.mxu0 %v344_v0  ;;  %261 = vmatprep.mubr.msk.bf16.mxu0 %vm345_vm0, %v344_v0  ;;  %v42_v1 = vld [vmem:[#allocation2] sm:$0xf]  ;;  %vm55_vm2 = vcmask 64512   ;;  %v278_v4 = vld [vmem:[%s436_s5] sm:$0xff]   ;;  %vm146_vm3 = vcmask 130048   ;;  %vm213_vm4 = vcmask 125952  }
  0x14   :  { %265 = vmatprep.subr.bf16.mxu1 %v344_v0  ;;  %267 = vmatprep.mubr.msk.bf16.mxu1 %vm345_vm0, %v344_v0  ;;  %v61_v2 = vsel %vm59_vm1, %v42_v1, 0  ;;  %v248_v5 = vld [vmem:[%s432_s1] sm:$0xff]  }
  0x15   :  { %260 = vmatpush3.bf16.msra.mxu0 %v61_v2  ;;  %266 = vmatpush3.bf16.msra.mxu1 %v278_v4  ;;  %v233_v6 = vld [vmem:[%s435_s4] ss:$0 sm:$0xff]  ;;  %v249_v8 = vunpack.c.l.bf16 %v248_v5  ;;  %v250_v13 = vunpack.c.h.bf16 %v248_v5 }
  0x16   :  { %v252_v7 = vld [vmem:[%s433_s2] sm:$0xff]   ;;  %s346_s2 = smov [#allocation5]  }
  0x17   :  { %v253_v11 = vunpack.c.l.bf16 %v252_v7  ;;  %v254_v17 = vunpack.c.h.bf16 %v252_v7  ;;  %v238_v33 = vld [vmem:[%s437_s6] ss:$0 sm:$0xff]  ;;  %s221_s4 = sshll.u32 %s346_s2, 4  ;;  %s222_s4 = int_to_ptr.vmem [resolvable:$true] %s221_s4 }
  0x18   :  { %262 = vmatmul.mubr.msk.bf16.vlgmr.msra.gmra.mrb[0].mxu0 %vm55_vm2, %v277_v3  ;;  %s317_s5 = scalar_lea.vmem %s222_s4, 128  ;;  %p322_p9 = scmp.lt.s32.totalorder %s222_s4, %s222_s4 }
  0x19   :  { %p318_p8 = scmp.ne.s32.totalorder %s222_s4, %s317_s5  ;;  %p323_p10 = scmp.lt.s32.totalorder %s317_s5, %s317_s5 }
  0x1b   :  { %p324_p11 = por %p323_p10, %p322_p9 }
  0x1d   :  { %p325_p12 = pnand %p324_p11, %p318_p8 }
  0xeb   :  { %v97_v9 = vpop.f32.mrb[0].mxu0 }
  0xec   :  { %v98_v10 = vadd.f32 %v233_v6, %v97_v9  ;;  %v263_v12 = vpop.f32.mrb[1].mxu0 }
  0xed   :  { %v100_v14 = vpop.f32.mrb[2].mxu0 }
  0xee   :  { %v108_v15 = vadd.f32 %v249_v8, %v98_v10  ;;  %v101_v16 = vadd.f32 %v233_v6, %v100_v14  ;;  %v264_v18 = vpop.f32.mrb[3].mxu0 }
  0xf0   :  { %v114_v19 = vadd.f32 %v253_v11, %v108_v15  ;;  %v109_v20 = vadd.f32 %v250_v13, %v101_v16 }
  0xf2   :  { %v236_v21 = vmul.f32 -1.442695, %v114_v19  ;;  %v115_v22 = vadd.f32 %v254_v17, %v109_v20 }
  0xf4   :  { %279 = vpow2.f32 %v236_v21  ;;  %v237_v23 = vmul.f32 -1.442695, %v115_v22 }
  0xf6   :  { %281 = vpow2.f32 %v237_v23 }
  0xfe   :  { %v280_v24 = vpop.eup %279 }
  0xff   :  { %v122_v25 = vadd.f32 1.0, %v280_v24 }
 0x100   :  { %v282_v26 = vpop.eup %281 }
 0x101   :  { %283 = vrcp.f32 %v122_v25  ;;  %v123_v27 = vadd.f32 1.0, %v282_v26 }
 0x103   :  { %285 = vrcp.f32 %v123_v27 }
 0x10b   :  { %v284_v28 = vpop.eup %283 }
 0x10c   :  { %v128_v30 = vmul.f32 %v284_v28, %v114_v19 }
 0x10d   :  { %v286_v29 = vpop.eup %285 }
 0x10e   :  { %v129_v31 = vmul.f32 %v286_v29, %v115_v22 }
 0x110   :  { %v130_v32 = vpack.c.bf16 %v129_v31, %v128_v30 }
 0x112   :  { %268 = vmatmul.mubr.msk.bf16.vlgmr.msra.gmra.mrb[0].mxu1 %vm146_vm3, %v130_v32 }
 0x1e5   :  { %v184_v34 = vpop.f32.mrb[0].mxu1 }
 0x1e6   :  { %v185_v35 = vadd.f32 %v238_v33, %v184_v34  ;;  %v269_v36 = vpop.f32.mrb[1].mxu1 }
 0x1e7   :  { %v187_v37 = vpop.f32.mrb[2].mxu1 }
 0x1e8   :  { %v241_v38 = vmul.f32 -1.442695, %v185_v35  ;;  %v188_v39 = vadd.f32 %v238_v33, %v187_v37  ;;  %v270_v40 = vpop.f32.mrb[3].mxu1 }
 0x1ea   :  { %287 = vpow2.f32 %v241_v38  ;;  %v242_v41 = vmul.f32 -1.442695, %v188_v39 }
 0x1ec   :  { %289 = vpow2.f32 %v242_v41 }
 0x1f4   :  { %v288_v42 = vpop.eup %287 }
 0x1f5   :  { %v197_v43 = vadd.f32 1.0, %v288_v42 }
 0x1f6   :  { %v290_v44 = vpop.eup %289 }
 0x1f7   :  { %291 = vrcp.f32 %v197_v43  ;;  %v198_v45 = vadd.f32 1.0, %v290_v44 }
 0x1f9   :  { %293 = vrcp.f32 %v198_v45 }
 0x201   :  { %v292_v46 = vpop.eup %291 }
 0x202   :  { %v203_v47 = vmul.f32 %v292_v46, %v185_v35 }
 0x203   :  { %v294_v48 = vpop.eup %293 }
 0x204   :  { %v245_v49 = vpack.c.bf16 %v203_v47, %v203_v47  ;;  %v204_v50 = vmul.f32 %v294_v48, %v188_v39 }
 0x206   :  { %214 = vst.msk [vmem:[#allocation5] sm:$0xf] %vm213_vm4, %v245_v49  ;;  %v246_v51 = vpack.c.bf16 %v204_v50, %v204_v50 }
 0x208   :  { %215 = vst.msk [vmem:[#allocation5 + $0x4] sm:$0xf] %vm213_vm4, %v246_v51 }
 0x209   :  { %328 = shalt.err (!%p325_p12)
}
 0x20a   :  { %s329_s23 = scalar_lea.hbm %s438_s7, 128 }
 0x20b   :  { %p330_p13 = scmp.ne.s32.totalorder %s438_s7, %s329_s23  ;;  %p333_p0 = scmp.lt.u32.totalorder %s329_s23, %s438_s7 }
 0x20d   :  { %p335_p1 = pnand %p333_p0, %p330_p13 }
 0x20f   :  { %338 = shalt.err (!%p335_p1)
}
 0x210   :  { %s347_s28 = smov 64   ;;  %s348_s29 = smov 4  }
 0x211   :  { %227 = dma.vmem_to_hbm [thread:$0]  %s222_s4, 128, %s438_s7, [#allocation4], %s347_s28, %s347_s28, %s348_s29  }
 0x212   :  { %341 = dma.done.wait [#allocation4], 128  }
 0x213   :  { %342 = vsyncadd [#allocation4], 4294967168 }
 0x214   :  { %231 = vsyncpa [#allocation3], 1 }
 0x215   :  { %232 = vsyncpa [#allocation4], 1 }

</bundles_post_ra>
